<compile_context>
chip_gen: v6e
topology: v6e:2x2x1
jax: 0.10.0
libtpu: 0.0.40
codegen_flags: <defaults>
</compile_context>

<pallas_src>
import jax
import jax.numpy as jnp
from jax.experimental import pallas as pl
from jax.experimental.pallas import tpu as pltpu

NEG_SLOPE = 0.01   # nn.LeakyReLU default
BN_EPS = 1e-5      # nn.BatchNorm1d default


def _round_up(n, m):
    return -(-n // m) * m


def _make_kernel(K, ci_p, co_p, W1y, NcP, pad, has_proj):
    """Two fused-tap MXU matmuls on a batch-fused, lane-dense layout."""

    def body(x_ref, w1_ref, w2_ref, wr_ref, b1_ref, b2_ref, m1_ref, out_ref):
        # Pre-stacked input: rows [t*ci_p:(t+1)*ci_p] are the tap-t shifted window.
        xs = x_ref[0]                                    # (K*ci_p, W1y)

        # ---- conv1 (Cin->Cin): all K taps in ONE dot (BN1 scale pre-folded) -------
        y = jnp.dot(w1_ref[...], xs, preferred_element_type=jnp.float32)  # (ci_p, W1y)
        y = y + b1_ref[...]                              # BN1 shift
        y = jnp.where(y >= 0, y, NEG_SLOPE * y)          # LeakyReLU; Dropout(0.0)=id
        y = y * m1_ref[...]                              # zero segment pads / edges

        # ---- conv2 (Cin->Cout): stack the K shifted views along sublanes (XLU) ----
        # -> single dot with a K*Cin contraction (1/K the RHS-tile latches).
        ys = jnp.concatenate([y[:, t:t + NcP] for t in range(K)], axis=0)  # (K*ci_p, NcP)
        z = jnp.dot(w2_ref[...], ys, preferred_element_type=jnp.float32)   # (co_p, NcP)
        z = z + b2_ref[...]                              # BN2 shift

        # ---- residual: center window of the stacked input (lane offset 0, --------
        # 8-aligned sublane offset -> free slice).
        x_ctr = xs[2 * pad * ci_p:(2 * pad + 1) * ci_p, 0:NcP]
        if has_proj:
            z = z + jnp.dot(wr_ref[...], x_ctr, preferred_element_type=jnp.float32)
        else:
            z = z + x_ctr                                # exact identity residual

        z = jnp.where(z >= 0, z, NEG_SLOPE * z)          # final LeakyReLU

        # Fully unmasked lane-dense store (co_p % 8 == 0, NcP % 128 == 0).
        # AvgPool1d(2,2) pair-mean + column selection happen wrapper-side.
        out_ref[0] = z.astype(out_ref.dtype)

    if has_proj:
        def kernel(x_ref, w1_ref, w2_ref, wr_ref, b1_ref, b2_ref, m1_ref, out_ref):
            body(x_ref, w1_ref, w2_ref, wr_ref, b1_ref, b2_ref, m1_ref, out_ref)
    else:
        def kernel(x_ref, w1_ref, w2_ref, b1_ref, b2_ref, m1_ref, out_ref):
            body(x_ref, w1_ref, w2_ref, None, b1_ref, b2_ref, m1_ref, out_ref)
    return kernel


def _pick_batch_block(B, Lp, lane_target=2048):
    """Return (Bblk, nb).  Fused lane width Bblk*Lp <= lane_target (vreg-pressure
    cap), and nb >= 2 grid steps whenever B >= 2 (v7x megacore sharding + double
    buffering).  The caller pads B up to nb*Bblk (non-divisor batches allowed)."""
    bblk_max = max(1, lane_target // Lp)
    if B <= 1:
        return 1, 1
    nb = max(2, -(-B // bblk_max))
    return -(-B // nb), nb


def conv1d_residual_block(x, w1_oik, w2_oik, wr_oik,
                          g1, be1, m1, v1, g2, be2, m2, v2, *, lane_target=2048):
    """x: (B, Cin, L) float32; conv weights in PyTorch (O, I, K) layout, bias=False;
    BatchNorm given as eval-mode (gamma, beta, running_mean, running_var).
    Returns (B, Cout, L // 2)."""
    B, c_in, L = x.shape
    c_out, _, K = w2_oik.shape
    pad = (K - 1) // 2
    Lp = L + 2 * pad                       # per-segment padded length
    Lo = L // 2                            # AvgPool1d(2,2) output length
    has_proj = (c_in != c_out)
    f32 = jnp.float32

    # Channel padding to sublane multiples: unmasked sublane stores + aligned slabs.
    ci_p = _round_up(c_in, 8)
    co_p = _round_up(c_out, 8)

    Bblk, nb = _pick_batch_block(B, Lp, lane_target)
    Bpad = nb * Bblk                       # padded batch
    Nc = Bblk * Lp                         # logical fused segment width
    NcP = _round_up(Nc, 128)               # lane-padded -> unmasked lane-dense store
    W1y = NcP + 2 * pad                    # intermediate activation width

    # ---- fold eval-mode BatchNorm: scale into conv weights, keep additive shift ----
    s1 = g1 / jnp.sqrt(v1 + BN_EPS)
    s2 = g2 / jnp.sqrt(v2 + BN_EPS)
    sh1 = jnp.zeros((ci_p, 1), f32).at[:c_in, 0].set((be1 - m1 * s1).astype(f32))
    sh2 = jnp.zeros((co_p, 1), f32).at[:c_out, 0].set((be2 - m2 * s2).astype(f32))

    w1f = (jnp.transpose(w1_oik, (2, 0, 1)) * s1[None, :, None]).astype(f32)  # (K,O,I)
    w2f = (jnp.transpose(w2_oik, (2, 0, 1)) * s2[None, :, None]).astype(f32)  # (K,O,I)
    w1p = jnp.zeros((K, ci_p, ci_p), f32).at[:, :c_in, :c_in].set(w1f)
    w2p = jnp.zeros((K, co_p, ci_p), f32).at[:, :c_out, :c_in].set(w2f)
    # Tap-stacked weights: column block t multiplies the tap-t shifted activation.
    w1s = jnp.transpose(w1p, (1, 0, 2)).reshape(ci_p, K * ci_p)                # (O, K*I)
    w2s = jnp.transpose(w2p, (1, 0, 2)).reshape(co_p, K * ci_p)                # (O, K*I)

    # ---- activations: fuse batch into the lane axis, pre-stack the K shifts --------
    xT = jnp.transpose(x, (1, 0, 2)).astype(f32)                      # (Cin, B, L)
    xT = jnp.pad(xT, ((0, ci_p - c_in), (0, Bpad - B), (pad, pad)))   # (ci_p, Bpad, Lp)
    xs = jnp.transpose(xT.reshape(ci_p, nb, Bblk, Lp), (1, 0, 2, 3))
    xs = xs.reshape(nb, ci_p, Nc)
    xs = jnp.pad(xs, ((0, 0), (0, 0), (0, NcP - Nc)))                 # lane pad to 128x
    xg = jnp.pad(xs, ((0, 0), (0, 0), (2 * pad, 2 * pad)))            # global edge pad
    x_stack = jnp.concatenate([xg[:, :, t:t + W1y] for t in range(K)],
                              axis=1)                                 # (nb, K*ci_p, W1y)

    # Interior mask over y columns: 1 on real data, 0 on per-segment pads, global
    # edges and the lane-padding tail (realizes conv2's zero padding per segment).
    c = jnp.arange(W1y) - pad
    interior = (c >= 0) & (c < Nc) & ((c % Lp) >= pad) & ((c % Lp) < pad + L)
    mask = interior.astype(f32)[None, :]                              # (1, W1y)

    kernel = _make_kernel(K, ci_p, co_p, W1y, NcP, pad, has_proj)

    in_specs = [
        pl.BlockSpec((1, K * ci_p, W1y), lambda g: (g, 0, 0)),   # stacked x block
        pl.BlockSpec((ci_p, K * ci_p), lambda g: (0, 0)),        # w1 (tap-stacked)
        pl.BlockSpec((co_p, K * ci_p), lambda g: (0, 0)),        # w2 (tap-stacked)
    ]
    args = [x_stack, w1s, w2s]
    if has_proj:
        wrp = jnp.zeros((co_p, ci_p), f32).at[:c_out, :c_in].set(
            jnp.asarray(wr_oik[:, :, 0], f32))                   # 1x1 projection
        in_specs.append(pl.BlockSpec((co_p, ci_p), lambda g: (0, 0)))
        args.append(wrp)
    in_specs += [
        pl.BlockSpec((ci_p, 1), lambda g: (0, 0)),               # BN1 shift
        pl.BlockSpec((co_p, 1), lambda g: (0, 0)),               # BN2 shift
        pl.BlockSpec((1, W1y), lambda g: (0, 0)),                # interior mask
    ]
    args += [sh1, sh2, mask]

    grid_spec = pltpu.PrefetchScalarGridSpec(
        num_scalar_prefetch=0,
        grid=(nb,),
        in_specs=in_specs,
        out_specs=pl.BlockSpec((1, co_p, NcP), lambda g: (g, 0, 0)),
    )

    out = pl.pallas_call(
        kernel,
        out_shape=jax.ShapeDtypeStruct((nb, co_p, NcP), x.dtype),
        grid_spec=grid_spec,
        compiler_params=pltpu.CompilerParams(
            # Batch-block axis is fully independent -> shard across TensorCores
            # (2x on v7x megacore; neutral on v5e/v6e single-TC chips).
            dimension_semantics=("parallel",)),
    )(*args)

    # AvgPool1d(2,2) + un-fuse batch from the lane axis (trivial XLA ops).
    out = out[:, :c_out, :Nc].reshape(nb, c_out, Bblk, Lp)
    out = out[:, :, :, pad:pad + 2 * Lo]
    out = out.reshape(nb, c_out, Bblk, Lo, 2).mean(axis=-1)
    out = jnp.transpose(out, (0, 2, 1, 3)).reshape(Bpad, c_out, Lo)
    return out[:B]


# ---------------- pure-JAX reference (matches PyTorch module semantics) -------------
def _reference(x, w1_oik, w2_oik, wr_oik, g1, be1, m1, v1, g2, be2, m2, v2):
    def conv(inp, w, p):
        return jax.lax.conv_general_dilated(
            inp, w, window_strides=(1,), padding=[(p, p)],
            dimension_numbers=("NCH", "OIH", "NCH"))

    def bn(inp, g, b, m, v):
        return ((inp - m[None, :, None]) / jnp.sqrt(v[None, :, None] + BN_EPS)
                * g[None, :, None] + b[None, :, None])

    def lrelu(inp):
        return jnp.where(inp >= 0, inp, NEG_SLOPE * inp)

    c_in, c_out = w1_oik.shape[1], w2_oik.shape[0]
    pad = (w1_oik.shape[2] - 1) // 2
    y = conv(x, w1_oik, pad)
    y = lrelu(bn(y, g1, be1, m1, v1))
    y = conv(y, w2_oik, pad)
    y = bn(y, g2, be2, m2, v2)
    y = y + (conv(x, wr_oik, 0) if c_in != c_out else x)
    y = lrelu(y)
    B, C, Ly = y.shape
    Lo = Ly // 2
    return y[:, :, :2 * Lo].reshape(B, C, Lo, 2).mean(-1)


def _run_case(key, B, c_in, c_out, L, K=3):
    keys = jax.random.split(key, 12)
    x = jax.random.normal(keys[0], (B, c_in, L), jnp.float32)

    # Conv weights in PyTorch (O, I, K) layout, bias=False.
    w1 = 0.3 * jax.random.normal(keys[1], (c_in, c_in, K), jnp.float32)
    w2 = 0.3 * jax.random.normal(keys[2], (c_out, c_in, K), jnp.float32)
    wr = 0.3 * jax.random.normal(keys[3], (c_out, c_in, 1), jnp.float32)

    # BatchNorm (eval mode: running stats + affine).
    g1 = 1.0 + 0.1 * jax.random.normal(keys[4], (c_in,), jnp.float32)
    be1 = 0.1 * jax.random.normal(keys[5], (c_in,), jnp.float32)
    m1 = 0.1 * jax.random.normal(keys[6], (c_in,), jnp.float32)
    v1 = 0.5 + jax.random.uniform(keys[7], (c_in,), jnp.float32)
    g2 = 1.0 + 0.1 * jax.random.normal(keys[8], (c_out,), jnp.float32)
    be2 = 0.1 * jax.random.normal(keys[9], (c_out,), jnp.float32)
    m2 = 0.1 * jax.random.normal(keys[10], (c_out,), jnp.float32)
    v2 = 0.5 + jax.random.uniform(keys[11], (c_out,), jnp.float32)

    out = jax.block_until_ready(conv1d_residual_block(
        x, w1, w2, wr, g1, be1, m1, v1, g2, be2, m2, v2))
    ref = jax.block_until_ready(_reference(
        x, w1, w2, wr, g1, be1, m1, v1, g2, be2, m2, v2))

    assert out.shape == (B, c_out, L // 2), out.shape
    err = float(jnp.abs(out - ref).max())
    assert jnp.allclose(out, ref, atol=1e-4, rtol=1e-4), err


if __name__ == "__main__":
    key_a, key_b, key_c = jax.random.split(jax.random.PRNGKey(0), 3)
    _run_case(key_a, B=2, c_in=4, c_out=8, L=16)    # proj residual, channel padding
    _run_case(key_b, B=3, c_in=6, c_out=6, L=16)    # identity residual, padded batch
    _run_case(key_c, B=4, c_in=8, c_out=16, L=64)   # multi-vreg lane width, Cout>8
    print("KERNEL_OK")
</pallas_src>

<mosaic_0001>
module attributes {stable_mosaic.version = 11 : i64} {
  func.func @kernel(%arg0: i32, %arg1: memref<1x24x130xf32, #tpu.memory_space<vmem>>, %arg2: memref<8x24xf32, #tpu.memory_space<vmem>>, %arg3: memref<8x24xf32, #tpu.memory_space<vmem>>, %arg4: memref<8x8xf32, #tpu.memory_space<vmem>>, %arg5: memref<8x1xf32, #tpu.memory_space<vmem>>, %arg6: memref<8x1xf32, #tpu.memory_space<vmem>>, %arg7: memref<1x130xf32, #tpu.memory_space<vmem>>, %arg8: memref<1x8x128xf32, #tpu.memory_space<vmem>>) attributes {dimension_semantics = [#tpu.dimension_semantics<parallel>], iteration_bounds = array<i64: 2>, scalar_prefetch = 0 : i64, scratch_operands = 0 : i64, tpu.core_type = #tpu.core_type<tc>, window_params = [{transform_indices = @transform_0, window_bounds = array<i64: 1, 24, 130>}, {pipeline_mode = #tpu.pipeline_mode<synchronous>, transform_indices = @transform_1, window_bounds = array<i64: 8, 24>}, {pipeline_mode = #tpu.pipeline_mode<synchronous>, transform_indices = @transform_2, window_bounds = array<i64: 8, 24>}, {pipeline_mode = #tpu.pipeline_mode<synchronous>, transform_indices = @transform_3, window_bounds = array<i64: 8, 8>}, {pipeline_mode = #tpu.pipeline_mode<synchronous>, transform_indices = @transform_4, window_bounds = array<i64: 8, 1>}, {pipeline_mode = #tpu.pipeline_mode<synchronous>, transform_indices = @transform_5, window_bounds = array<i64: 8, 1>}, {pipeline_mode = #tpu.pipeline_mode<synchronous>, transform_indices = @transform_6, window_bounds = array<i64: 1, 130>}, {transform_indices = @transform_7, window_bounds = array<i64: 1, 8, 128>}]} {
    %c0 = arith.constant 0 : index
    %c0_0 = arith.constant 0 : index
    %c0_1 = arith.constant 0 : index
    %0 = vector.load %arg1[%c0, %c0_0, %c0_1] : memref<1x24x130xf32, #tpu.memory_space<vmem>>, vector<1x24x130xf32>
    %1 = vector.shape_cast %0 : vector<1x24x130xf32> to vector<24x130xf32>
    %c0_2 = arith.constant 0 : index
    %c0_3 = arith.constant 0 : index
    %2 = vector.load %arg2[%c0_2, %c0_3] : memref<8x24xf32, #tpu.memory_space<vmem>>, vector<8x24xf32>
    %cst = arith.constant dense<0.000000e+00> : vector<8x130xf32>
    %3 = tpu.matmul %2, %1, %cst {dimension_numbers = #tpu.dot_dimension_numbers<[1], [0], [0], [1], [0, 0, 1, 1], [], []>} : vector<8x24xf32>, vector<24x130xf32>, vector<8x130xf32> -> vector<8x130xf32>
    %c0_4 = arith.constant 0 : index
    %c0_5 = arith.constant 0 : index
    %4 = vector.load %arg5[%c0_4, %c0_5] : memref<8x1xf32, #tpu.memory_space<vmem>>, vector<8x1xf32>
    %5 = vector.broadcast %4 : vector<8x1xf32> to vector<8x130xf32>
    %6 = arith.addf %3, %5 : vector<8x130xf32>
    %cst_6 = arith.constant 0.000000e+00 : f32
    %7 = vector.broadcast %cst_6 : f32 to vector<8x130xf32>
    %8 = arith.cmpf oge, %6, %7 : vector<8x130xf32>
    %cst_7 = arith.constant 0.00999999977 : f32
    %9 = vector.broadcast %cst_7 : f32 to vector<8x130xf32>
    %10 = arith.mulf %9, %6 : vector<8x130xf32>
    %11 = arith.select %8, %6, %10 : vector<8x130xi1>, vector<8x130xf32>
    %c0_8 = arith.constant 0 : index
    %c0_9 = arith.constant 0 : index
    %12 = vector.load %arg7[%c0_8, %c0_9] : memref<1x130xf32, #tpu.memory_space<vmem>>, vector<1x130xf32>
    %13 = vector.broadcast %12 : vector<1x130xf32> to vector<8x130xf32>
    %14 = arith.mulf %11, %13 : vector<8x130xf32>
    %15 = vector.extract_strided_slice %14 {offsets = [0, 0], sizes = [8, 128], strides = [1, 1]} : vector<8x130xf32> to vector<8x128xf32>
    %16 = vector.extract_strided_slice %14 {offsets = [0, 1], sizes = [8, 128], strides = [1, 1]} : vector<8x130xf32> to vector<8x128xf32>
    %17 = vector.extract_strided_slice %14 {offsets = [0, 2], sizes = [8, 128], strides = [1, 1]} : vector<8x130xf32> to vector<8x128xf32>
    %18 = tpu.concatenate %15, %16, %17 in 0 : vector<8x128xf32>, vector<8x128xf32>, vector<8x128xf32> -> vector<24x128xf32>
    %c0_10 = arith.constant 0 : index
    %c0_11 = arith.constant 0 : index
    %19 = vector.load %arg3[%c0_10, %c0_11] : memref<8x24xf32, #tpu.memory_space<vmem>>, vector<8x24xf32>
    %cst_12 = arith.constant dense<0.000000e+00> : vector<8x128xf32>
    %20 = tpu.matmul %19, %18, %cst_12 {dimension_numbers = #tpu.dot_dimension_numbers<[1], [0], [0], [1], [0, 0, 1, 1], [], []>} : vector<8x24xf32>, vector<24x128xf32>, vector<8x128xf32> -> vector<8x128xf32>
    %c0_13 = arith.constant 0 : index
    %c0_14 = arith.constant 0 : index
    %21 = vector.load %arg6[%c0_13, %c0_14] : memref<8x1xf32, #tpu.memory_space<vmem>>, vector<8x1xf32>
    %22 = vector.broadcast %21 : vector<8x1xf32> to vector<8x128xf32>
    %23 = arith.addf %20, %22 : vector<8x128xf32>
    %24 = vector.extract_strided_slice %1 {offsets = [16, 0], sizes = [8, 128], strides = [1, 1]} : vector<24x130xf32> to vector<8x128xf32>
    %c0_15 = arith.constant 0 : index
    %c0_16 = arith.constant 0 : index
    %25 = vector.load %arg4[%c0_15, %c0_16] : memref<8x8xf32, #tpu.memory_space<vmem>>, vector<8x8xf32>
    %cst_17 = arith.constant dense<0.000000e+00> : vector<8x128xf32>
    %26 = tpu.matmul %25, %24, %cst_17 {dimension_numbers = #tpu.dot_dimension_numbers<[1], [0], [0], [1], [0, 0, 1, 1], [], []>} : vector<8x8xf32>, vector<8x128xf32>, vector<8x128xf32> -> vector<8x128xf32>
    %27 = arith.addf %23, %26 : vector<8x128xf32>
    %cst_18 = arith.constant 0.000000e+00 : f32
    %28 = vector.broadcast %cst_18 : f32 to vector<8x128xf32>
    %29 = arith.cmpf oge, %27, %28 : vector<8x128xf32>
    %cst_19 = arith.constant 0.00999999977 : f32
    %30 = vector.broadcast %cst_19 : f32 to vector<8x128xf32>
    %31 = arith.mulf %30, %27 : vector<8x128xf32>
    %32 = arith.select %29, %27, %31 : vector<8x128xi1>, vector<8x128xf32>
    %c0_20 = arith.constant 0 : index
    %c0_21 = arith.constant 0 : index
    %c0_22 = arith.constant 0 : index
    %33 = vector.load %arg8[%c0_20, %c0_21, %c0_22] : memref<1x8x128xf32, #tpu.memory_space<vmem>>, vector<1x8x128xf32>
    %34 = vector.shape_cast %33 : vector<1x8x128xf32> to vector<8x128xf32>
    %35 = vector.shape_cast %32 : vector<8x128xf32> to vector<1x8x128xf32>
    tpu.vector_store %arg8[%c0_20, %c0_21, %c0_22], %35 {strides = array<i32>} : memref<1x8x128xf32, #tpu.memory_space<vmem>>, vector<1x8x128xf32>,
    return
  }
  func.func @transform_0(%arg0: i32) -> (i32, i32, i32) {
    %c0_i32 = arith.constant 0 : i32
    %c0_i32_0 = arith.constant 0 : i32
    %c0_i32_1 = arith.constant 0 : i32
    return %arg0, %c0_i32, %c0_i32_0 : i32, i32, i32
  }
  func.func @transform_1(%arg0: i32) -> (i32, i32) {
    %c0_i32 = arith.constant 0 : i32
    %c0_i32_0 = arith.constant 0 : i32
    %c0_i32_1 = arith.constant 0 : i32
    return %c0_i32, %c0_i32_0 : i32, i32
  }
  func.func @transform_2(%arg0: i32) -> (i32, i32) {
    %c0_i32 = arith.constant 0 : i32
    %c0_i32_0 = arith.constant 0 : i32
    %c0_i32_1 = arith.constant 0 : i32
    return %c0_i32, %c0_i32_0 : i32, i32
  }
  func.func @transform_3(%arg0: i32) -> (i32, i32) {
    %c0_i32 = arith.constant 0 : i32
    %c0_i32_0 = arith.constant 0 : i32
    %c0_i32_1 = arith.constant 0 : i32
    return %c0_i32, %c0_i32_0 : i32, i32
  }
  func.func @transform_4(%arg0: i32) -> (i32, i32) {
    %c0_i32 = arith.constant 0 : i32
    %c0_i32_0 = arith.constant 0 : i32
    %c0_i32_1 = arith.constant 0 : i32
    return %c0_i32, %c0_i32_0 : i32, i32
  }
  func.func @transform_5(%arg0: i32) -> (i32, i32) {
    %c0_i32 = arith.constant 0 : i32
    %c0_i32_0 = arith.constant 0 : i32
    %c0_i32_1 = arith.constant 0 : i32
    return %c0_i32, %c0_i32_0 : i32, i32
  }
  func.func @transform_6(%arg0: i32) -> (i32, i32) {
    %c0_i32 = arith.constant 0 : i32
    %c0_i32_0 = arith.constant 0 : i32
    %c0_i32_1 = arith.constant 0 : i32
    return %c0_i32, %c0_i32_0 : i32, i32
  }
  func.func @transform_7(%arg0: i32) -> (i32, i32, i32) {
    %c0_i32 = arith.constant 0 : i32
    %c0_i32_0 = arith.constant 0 : i32
    %c0_i32_1 = arith.constant 0 : i32
    return %arg0, %c0_i32, %c0_i32_0 : i32, i32, i32
  }
}

</mosaic_0001>

<bundles_post_ra>
// kernel: tpu_custom_call.1
= control target key start
LH: loop header
LB: loop body
LE: loop exit
PB: predicated region body
PF: predicated region fallthrough
CT: control target
= control target key end

     0   :  { %12 = vsyncpa [#allocation3], 0  ;;  %s1164_s0 = inlined_call_operand.hbm [shape: f32[2,24,130], index: 0, kind: input, shape index: {}]   ;;  %s1165_s1 = inlined_call_operand.vmem [shape: f32[8,24], index: 1, kind: input, shape index: {}]   ;;  %s1166_s2 = inlined_call_operand.vmem [shape: f32[8,24], index: 2, kind: input, shape index: {}]   ;;  %s1167_s3 = inlined_call_operand.hbm [shape: f32[8,8], index: 3, kind: input, shape index: {}]   ;;  %s1168_s4 = inlined_call_operand.vmem [shape: f32[8,1], index: 4, kind: input, shape index: {}]   ;;  %s1169_s5 = inlined_call_operand.vmem [shape: f32[8,1], index: 5, kind: input, shape index: {}]   ;;  %s1170_s6 = inlined_call_operand.vmem [shape: f32[1,130], index: 6, kind: input, shape index: {}]   ;;  %s1171_s7 = inlined_call_operand.hbm [shape: f32[2,8,128], index: 7, kind: output, shape index: {}]  }
   0x1   :  { %14 = vsyncpa [#allocation3 + $0x1], 0 }
   0x2   :  { %15 = vsyncpa [#allocation6], 0 }
   0x3   :  { %16 = vsyncpa [#allocation4], 0 }
   0x4   :  { %18 = vsyncpa [#allocation4 + $0x1], 0  ;;  %s966_s24 = smov 0   ;;  %s968_s25 = smov 0  }
   0x5   :  { %s970_s26 = smov 0   ;;  %s972_s27 = smov 0  }
   0x6 LB: > { %1177 = sst [smem:[#allocation11_spill]] %s910_s26  ;;  %s987_s28 = sadd.s32 4294967295, %s914_s27   ;;  %s914_s27 = sphi %s972_s27, %s1198_s27   ;;  %s910_s26 = sphi %s970_s26, %s1195_s26   ;;  %s906_s25 = sphi %s968_s25, %s1197_s25   ;;  %s902_s24 = sphi %s966_s24, %s1196_s24  }
   0x7   : > { %s688_s29 = sadd.s32 4294967294, %s914_s27   ;;  %s991_s30 = sadd.s32 1, %s914_s27  }
   0x8   : > { %s31_s8 = sadd.s32 1, %s910_s26  ;;  %s28_s9 = ssub.s32 %s914_s27, %s991_s30 }
   0x9   : > { %p38_p0 = scmp.ne.s32.totalorder %s910_s26, %s906_s25  ;;  %p29_p1 = scmp.eq.s32.totalorder %s28_s9, 0 }
   0xa   : > { %p39_p2 = scmp.eq.s32.totalorder %s914_s27, 0  ;;  %p44_p3 = scmp.ne.s32.totalorder %s906_s25, %s902_s24 }
   0xb   : > { %p1172_p4 = scmp.eq.s32.totalorder %s987_s28, 0  ;;  %p194_p7 = scmp.eq.s32.totalorder %s987_s28, 1 }
   0xc   : > { %s1003_s10 = scalar_select %p29_p1, %s910_s26, %s31_s8  }
   0xd   : > { %p1005_p5 = por %p39_p2, %p38_p0  ;;  %p1011_p6 = por %p1172_p4, %p44_p3 }
   0xe   : > { %1178 = sst [smem:[#allocation12_spill]] %s1003_s10  ;;  %p200_p8 = scmp.eq.s32.totalorder %s688_s29, 1 }
   0xf   : > { %s1180_s12 = scalar_select %p1011_p6, 1, 0 }
  0x10   : > { %p689_p9 = scmp.ge.s32.totalorder %s914_s27, 1  ;;  %p207_p10 = scmp.lt.s32.totalorder %s914_s27, 3 }
  0x11   : > { %p1018_p11 = por %p194_p7, %p38_p0  ;;  %p1022_p12 = por %p200_p8, %p44_p3 }
  0x12   : > { %p1026_p13 = pnand %p689_p9, %p207_p10  ;;  %s916_s16 = smov [#allocation5]  }
  0x13   : > { %s1181_s13 = scalar_select %p1018_p11, 1, 0 }
  0x14   : > { %s1182_s14 = scalar_select %p1022_p12, 1, 0 }
  0x15   : > { %s1183_s15 = scalar_select %p1026_p13, 1, 0 }
  0x16   : > { %p734_p2 = pneg %p1026_p13  ;;  %s226_s17 = sshll.u32 %s916_s16, 4  ;;  %s227_s17 = int_to_ptr.vmem [resolvable:$true] %s226_s17 }
  0x17   : > { %p747_p4 = scmp.lt.s32.totalorder %s914_s27, 2  ;;  %p1184_p0 = scmp.eq.s32.totalorder %s987_s28, 0 }
  0x18   : > { %s246_s19 = sand.u32 1, %s910_s26   ;;  %s803_s22 = scalar_lea.vmem %s227_s17, 128 }
  0x19   : > { %p1036_p7 = pnand %p734_p2, %p1184_p0  ;;  %p1043_p3 = pnand %p747_p4, %p1005_p5 }
  0x1a   : > { %s723_s21 = smul.u32 48, %s246_s19  ;;  %p804_p9 = scmp.ne.s32.totalorder %s227_s17, %s803_s22 }
  0x1b   : > { %p794_p8 = pneg %p1036_p7  ;;  %p811_p12 = scmp.lt.s32.totalorder %s227_s17, %s227_s17 }
  0x1c   : > { %p812_p11 = scmp.lt.s32.totalorder %s803_s22, %s803_s22 }
  0x1d   : > { %p806_p10 = pnand %p804_p9, %p794_p8 }
  0x1e   : > { %p813_p2 = por %p812_p11, %p811_p12 }
  0x1f   : > { %p807_p1 = pneg %p806_p10 }
  0x21   : > { %p814_p0 = pnand %p813_p2, %p807_p1 }
  0x23   : > { %817 = shalt.err (!%p814_p0)
}
  0x24   : > { %737 = dma.hbm_to_vmem [thread:$0]  (!%p1036_p7), %s1167_s3, 128, %s227_s17, [#allocation6]  }
  0x25   : > { %s724_s8 = smul.u32 768, %s914_s27  ;;  %s250_s9 = scalar_lea.vmem [#allocation2], %s723_s21 }
  0x26   : > { %s257_s11 = sshll.u32 %s250_s9, 4  ;;  %s1062_s18 = scalar_lea.sflag [#allocation3], %s246_s19  ;;  %s1055_s11 = int_to_ptr.vmem [resolvable:$true] %s257_s11 }
  0x27   : > { %s1060_s22 = scalar_lea.hbm %s1164_s0, %s724_s8  ;;  %p820_p5 = pneg %p1043_p3 }
  0x28   : > { %s818_s26 = scalar_lea.hbm %s1060_s22, 768  ;;  %s823_s23 = scalar_lea.hbm %s1164_s0, 1536 }
  0x29   : > { %p819_p4 = scmp.ne.s32.totalorder %s1060_s22, %s818_s26  ;;  %p824_p1 = scmp.lt.s32.totalorder %s1060_s22, %s1164_s0 }
  0x2a   : > { %p825_p7 = scmp.lt.s32.totalorder %s823_s23, %s818_s26 }
  0x2b   : > { %p821_p11 = pnand %p820_p5, %p819_p4 }
  0x2c   : > { %p826_p8 = por %p825_p7, %p824_p1 }
  0x2d   : > { %p822_p12 = pneg %p821_p11 }
  0x2f   : > { %p827_p9 = pnand %p826_p8, %p822_p12 }
  0x31   : > { %830 = shalt.err (!%p827_p9)
}
  0x32   : > { %s831_s10 = scalar_lea.vmem %s1055_s11, 768  ;;  %s917_s19 = smov [#allocation2]  }
  0x33   : > { %p832_p10 = scmp.ne.s32.totalorder %s1055_s11, %s831_s10  ;;  %s836_s8 = sshll.u32 %s917_s19, 4  ;;  %s837_s8 = int_to_ptr.vmem [resolvable:$false] %s836_s8 }
  0x34   : > { %s838_s16 = scalar_lea.vmem %s837_s8, 1536  ;;  %p839_p4 = scmp.lt.s32.totalorder %s1055_s11, %s837_s8 }
  0x35   : > { %p834_p2 = pnand %p832_p10, %p820_p5  ;;  %p840_p11 = scmp.lt.s32.totalorder %s838_s16, %s831_s10 }
  0x37   : > { %p835_p0 = pneg %p834_p2  ;;  %p841_p6 = por %p840_p11, %p839_p4 }
  0x39   : > { %p842_p13 = pnand %p841_p6, %p835_p0 }
  0x3b   : > { %845 = shalt.err (!%p842_p13)
}
  0x3c   : > { %s918_s26 = smov 256   ;;  %s919_s17 = smov 16  }
  0x3d   : > { %741 = dma.hbm_to_vmem [thread:$0]  (!%p1043_p3), %s1060_s22, 768, %s1055_s11, %s1062_s18, %s918_s26, %s918_s26, %s919_s17  }
  0x3e   : > { %p1187_p5 = scmp.ne.s32.totalorder %s1183_s15, 0 }
  0x3f   : > { %s1086_s21 = sand.u32 (!%p1187_p5), 1, %s906_s25   ;;  %p1188_p6 = scmp.ne.s32.totalorder (!%p1187_p5), %s1180_s12, 0 }
  0x40   : > { %269 = sbr.rel (%p1187_p5) target bundleno = 620 (0x26c), region = 48  ;;  %s272_s29 = scalar_lea.sflag (!%p1187_p5), [#allocation3], %s1086_s21 }
  0x41   : > { %s725_s23 = smul.u32 (!%p1187_p5), 48, %s1086_s21 }
  0x43   : > { %s275_s9 = scalar_lea.vmem (!%p1187_p5), [#allocation2], %s725_s23 }
  0x45   : > { %889 = dma.done.wait (%p1188_p6), %s272_s29, 768  }
  0x46   : > { %891 = vsyncadd (%p1188_p6), %s272_s29, 4294966528  ;;  %p1189_p13 = scmp.eq.s32.totalorder %s987_s28, 0 }
  0x48   : > { %893 = dma.done.wait (%p1189_p13), [#allocation6], 128   ;;  %p1190_p3 = pmov %p1189_p13 }
  0x49   : > { %v920_v0 = vmov 0.0   ;;  %v921_v1 = vmov 0   ;;  %v315_v2 = vld [vmem:[%s275_s9 + $0x28] sm:$0xff]  ;;  %v314_v3 = vld [vmem:[%s275_s9 + $0x20] sm:$0xff]  ;;  %v313_v4 = vld [vmem:[%s275_s9 + $0x18] sm:$0xff]  ;;  %vm323_vm0 = vcmask 195584   ;;  %v406_v10 = vlaneseq }
  0x4a   : > { %895 = vsyncadd (%p1190_p3), [#allocation6], 4294967168  ;;  %391 = vmatprep.mubr.f32.mxu0 %v920_v0  ;;  %790 = vset.pattern.permute.xlu0 %v921_v1  ;;  %v312_v5 = vld [vmem:[%s275_s9 + $0x10] sm:$0xff]  ;;  %v311_v6 = vld [vmem:[%s275_s9 + $0x8] sm:$0xff]  ;;  %vm922_vm2 = vmmov 0   ;;  %vm515_vm3 = vcmask 64512  }
  0x4b   : > { %709 = vmatprep.subr.mxu1 %v920_v0  ;;  %791 = vset.pattern.permute.xlu1 %v921_v1  ;;  %v317_v7 = vld [vmem:[%s1168_s4] sm:$0xff]  ;;  %v407_v11 = vshrl.u32 %v406_v10, 7  ;;  %s923_s10 = smov 126   ;;  %s924_s19 = smov 127   ;;  %vm431_vm5 = vcmask 1031168   ;;  %vm424_vm6 = vcmask 1039360  }
  0x4c   : > { %353 = vmatprep.subr.mxu0 %v315_v2  ;;  %v310_v8 = vld [vmem:[%s275_s9] sm:$0xff]  ;;  %320 = vperm.xlu0 %790, %v317_v7   ;;  %s695_s23 = sshll.u32 %s1086_s21, 3  ;;  %s700_s29 = sshll.u32 %s987_s28, 7 }
  0x4d   : > { %354 = vmatpush1.msra.mxu0 %v314_v3  ;;  %v316_v9 = vld [vmem:[%s1165_s1] sm:$0xff]  ;;  %v408_v13 = vsub.s32 0, %v407_v11  ;;  %v412_v16 = vsub.s32 1, %v407_v11  ;;  %715 = vmatprep.mubr.msk.f32.mxu1 %vm922_vm2, %v920_v0  ;;  %s309_s9 = scalar_lea.vmem [#allocation7], %s695_s23  ;;  %s1127_s11 = scalar_lea.hbm %s1171_s7, %s700_s29 }
  0x4e   : > { %355 = vmatprep.subr.mxu0 %v313_v4  ;;  %v404_v14 = vld [vmem:[%s1170_s6] sm:$0x3]  ;;  %s608_s12 = sshll.u32 %s309_s9, 4  ;;  %s595_s22 = scalar_lea.sflag [#allocation4], %s1086_s21  ;;  %s609_s12 = int_to_ptr.vmem [resolvable:$true] %s608_s12 }
  0x4f   : > { %356 = vmatpush1.msra.mxu0 %v312_v5  ;;  %v409_v19 = vrot.slane %v404_v14, %v408_v13  ;;  %v413_v22 = vrot.slane %v404_v14, %v412_v16  ;;  %v514_v23 = vld [vmem:[#allocation5] sm:$0xff]  ;;  %s846_s18 = scalar_lea.vmem %s609_s12, 128  ;;  %p1191_p1 = scmp.ne.s32.totalorder %s1181_s13, 0 }
  0x50   : > { %357 = vmatprep.subr.mxu0 %v311_v6  ;;  %v435_v29 = vld [vmem:[%s1169_s5] sm:$0xff]  ;;  %p847_p12 = scmp.ne.s32.totalorder %s609_s12, %s846_s18 }
  0x51   : > { %358 = vmatpush1.msra.mxu0 %v310_v8  ;;  %v434_v36 = vld [vmem:[%s1166_s2] sm:$0xff] }
  0x52   : > { %696 = vmatmul.mubr.msk.f32.vlgmr.msra.gmra.mxu0 %vm323_vm0, %v316_v9  ;;  %718 = vmatprep.subr.mxu0 %v920_v0  ;;  %p848_p7 = pnand %p847_p12, %p1191_p1 }
  0x53   : > { %719 = vmatpush3.msra.mxu0 %v314_v3  ;;  %720 = vmatprep.mubr.msk.f32.mxu0 %vm922_vm2, %v920_v0 }
  0x54   : > { %p849_p8 = pneg %p848_p7 }
  0x56   : > { %721 = vmatmul.mubr.msk.f32.vlgmr.msra.gmra.mxu0 %vm515_vm3, %v514_v23 }
  0xc7   : > { %v321_v12 = vpop.permute.xlu0 %320 }
 0x112   : > { %v393_v15 = vpop.f32.mrf.mxu0 }
 0x113   : > { %v394_v17 = vadd.f32 %v393_v15, %v321_v12 }
 0x114   : > { %v395_v18 = vpop.f32.mrf.mxu0 }
 0x115   : > { %vm398_vm1 = vcmp.ge.f32.partialorder %v394_v17, 0.0  ;;  %v400_v20 = vmul.f32 0.01, %v394_v17  ;;  %v396_v21 = vadd.f32 %v395_v18, %v321_v12 }
 0x116   : > { %v585_v37 = vpop.f32.mrf.mxu0 }
 0x117   : > { %v401_v24 = vmul.f32 0.01, %v396_v21  ;;  %v402_v25 = vsel %vm398_vm1, %v394_v17, %v400_v20  ;;  %vm399_vm4 = vcmp.ge.f32.partialorder %v396_v21, 0.0 }
 0x118   : > { %v416_v26 = vmul.f32 %v409_v19, %v402_v25  ;;  %v722_v38 = vpop.f32.mrf.mxu0 }
 0x119   : > { %v403_v27 = vsel %vm399_vm4, %v396_v21, %v401_v24 }
 0x11a   : > { %427 = vrot.lane.b32.xlu0 %v416_v26, %s923_s10  ;;  %v417_v28 = vmul.f32 %v413_v22, %v403_v27 }
 0x11c   : > { %429 = vrot.lane.b32.xlu1 %v417_v28, %s923_s10  ;;  %s925_s10 = smov [#allocation7]  }
 0x11d   : > { %s850_s28 = sshll.u32 %s925_s10, 4  ;;  %s851_s28 = int_to_ptr.vmem [resolvable:$false] %s850_s28 }
 0x11e   : > { %422 = vrot.lane.b32.xlu0 %v417_v28, %s924_s19  ;;  %p853_p9 = scmp.lt.s32.totalorder %s609_s12, %s851_s28 }
 0x120   : > { %420 = vrot.lane.b32.xlu1 %v416_v26, %s924_s19  ;;  %s852_s19 = scalar_lea.vmem %s851_s28, 256 }
 0x121   : > { %p854_p10 = scmp.lt.s32.totalorder %s852_s19, %s846_s18 }
 0x123   : > { %p855_p2 = por %p854_p10, %p853_p9 }
 0x124   : > { %438 = vperm.xlu1 %791, %v435_v29  }
 0x125   : > { %p856_p0 = pnand %p855_p2, %p849_p8 }
 0x18c   : > { %v428_v30 = vpop.permute.xlu0 %427 }
 0x18e   : > { %v430_v31 = vpop.permute.xlu1 %429 }
 0x18f   : > { %v432_v32 = vsel %vm431_vm5, %v428_v30, %v430_v31 }
 0x190   : > { %710 = vmatpush3.msra.mxu1 %v432_v32  ;;  %v423_v33 = vpop.permute.xlu0 %422 }
 0x191   : > { %711 = vmatprep.subr.mxu1 %v920_v0 }
 0x192   : > { %v421_v34 = vpop.permute.xlu1 %420 }
 0x193   : > { %v425_v35 = vsel %vm424_vm6, %v421_v34, %v423_v33 }
 0x194   : > { %712 = vmatpush3.msra.mxu1 %v425_v35 }
 0x195   : > { %713 = vmatprep.subr.mxu1 %v920_v0 }
 0x196   : > { %714 = vmatpush3.msra.mxu1 %v416_v26 }
 0x197   : > { %716 = vmatmul.mubr.msk.f32.vlgmr.msra.gmra.mxu1 %vm323_vm0, %v434_v36 }
 0x19f   : > { %v439_v39 = vpop.permute.xlu1 %438 }
 0x257   : > { %v510_v40 = vpop.f32.mrf.mxu1 }
 0x258   : > { %v511_v41 = vadd.f32 %v510_v40, %v439_v39 }
 0x259   : > { %v717_v42 = vpop.f32.mrf.mxu1 }
 0x25a   : > { %v589_v43 = vadd.f32 %v585_v37, %v511_v41 }
 0x25c   : > { %vm590_vm7 = vcmp.ge.f32.partialorder %v589_v43, 0.0  ;;  %v591_v44 = vmul.f32 0.01, %v589_v43 }
 0x25e   : > { %v592_v45 = vsel %vm590_vm7, %v589_v43, %v591_v44 }
 0x25f   : > { %593 = vst [vmem:[%s309_s9] sm:$0xff] %v592_v45 }
 0x260   : > { %859 = shalt.err (!%p856_p0)
}
 0x261   : > { %s860_s8 = scalar_lea.hbm %s1127_s11, 128  ;;  %s864_s26 = scalar_lea.hbm %s1171_s7, 256 }
 0x262   : > { %p861_p4 = scmp.ne.s32.totalorder %s1127_s11, %s860_s8  ;;  %p865_p6 = scmp.lt.s32.totalorder %s1127_s11, %s1171_s7 }
 0x263   : > { %p866_p13 = scmp.lt.s32.totalorder %s864_s26, %s860_s8 }
 0x264   : > { %p862_p11 = pnand %p861_p4, %p1191_p1 }
 0x265   : > { %p867_p3 = por %p866_p13, %p865_p6 }
 0x266   : > { %p863_p5 = pneg %p862_p11 }
 0x268   : > { %p868_p12 = pnand %p867_p3, %p863_p5 }
 0x26a   : > { %871 = shalt.err (!%p868_p12)
}
 0x26b   : > { %732 = dma.vmem_to_hbm [thread:$0]  (%p1191_p1), %s609_s12, 128, %s1127_s11, %s595_s22  }
 0x26c PF: > { %s620_s29 = sand.u32 1, %s902_s24   ;;  %p1192_p7 = scmp.ne.s32.totalorder %s1182_s14, 0 }
 0x26d   : > { %p1193_p8 = scmp.ge.s32.totalorder %s914_s27, 2  ;;  %s621_s9 = scalar_lea.sflag [#allocation4], %s620_s29 }
 0x26f   : > { %p743_p9 = pnand %p1193_p8, %p1192_p7 }
 0x271   : > { %p744_p10 = pneg %p743_p9 }
 0x273   : > { %897 = dma.done.wait (%p744_p10), %s621_s9, 128  }
 0x274   : > { %899 = vsyncadd (%p744_p10), %s621_s9, 4294967168  ;;  %s1194_s15 = sld [smem:[#allocation11_spill]]  ;;  %p21_p2 = scmp.ge.s32.totalorder %s991_s30, 4  }
 0x275   : > { %s1195_s26 = sld [smem:[#allocation12_spill]]  ;;  %s1196_s24 = smov %s906_s25 }
 0x276   : > { %s1198_s27 = smov %s991_s30  ;;  %23 = sbr.rel (!%p21_p2) target bundleno = 6 (0x6), region = 97 }
 0x27a   : > { %s1197_s25 = smov %s1194_s15 }
 0x27b   :  { %626 = vsyncpa [#allocation3], 1 }
 0x27c   :  { %628 = vsyncpa [#allocation3 + $0x1], 1 }
 0x27d   :  { %629 = vsyncpa [#allocation6], 1 }
 0x27e   :  { %630 = vsyncpa [#allocation4], 1 }
 0x27f   :  { %632 = vsyncpa [#allocation4 + $0x1], 1 }

</bundles_post_ra>
